<compile_context>
chip_gen: v5e
topology: v5e:2x2
jax: 0.10.0
libtpu: 0.0.40
codegen_flags: <defaults>
</compile_context>

<pallas_src>
import functools

import jax
import jax.numpy as jnp
from jax.experimental import pallas as pl
from jax.experimental.pallas import tpu as pltpu

_LANES = 128  # lane-dense task axis: lane 0 = w1, lane 1 = w2, lanes 2..127 zero


def _partial_sums_kernel(x_ref, w_ref, sum_ref, sq_ref, *,
                         n_rows, tile_n, steps_per_core):
    """One grid step: stream a (tile_n, D) tile of x, accumulate masked Σo / Σo²."""
    c = pl.program_id(0)   # "parallel" core-split axis (v7x: one per TensorCore)
    i = pl.program_id(1)   # "arbitrary" row-streaming axis

    @pl.when(i == 0)
    def _init():
        sum_ref[...] = jnp.zeros_like(sum_ref)
        sq_ref[...] = jnp.zeros_like(sq_ref)

    # Both linear layers in a single MXU matmul (f32 accumulate).
    o = jnp.dot(x_ref[...], w_ref[...],
                preferred_element_type=jnp.float32)          # (tile_n, 128)

    # Mask rows beyond the true N (no wrapper-side padding of x; the last tile
    # and any clamped duplicate tile contain unspecified rows that must be 0'd).
    row0 = (c * steps_per_core + i) * tile_n
    row_id = jax.lax.broadcasted_iota(jnp.int32, o.shape, 0) + row0
    o = jnp.where(row_id < n_rows, o, 0.0)

    # Sublane-deferred accumulation: vreg-wise VPU adds only; the single
    # cross-sublane reduce is done in the wrapper after the kernel.
    o8 = o.reshape(tile_n // 8, 8, _LANES)
    sum_ref[...] += jnp.sum(o8, axis=0)                      # Σ o   per (sublane, task)
    sq_ref[...] += jnp.sum(o8 * o8, axis=0)                  # Σ o²  per (sublane, task)


def _vmem_capacity_bytes():
    try:
        return int(pltpu.get_tpu_info().vmem_capacity_bytes)
    except Exception:
        return 64 * 1024 * 1024  # conservative default (v7x per-TC VMEM)


def _xla_loss(x, w1, w2, y, sigma):
    """Small-problem fallback: same closed form, pure XLA (no kernel launch)."""
    xf = x.astype(jnp.float32)
    o1 = xf @ w1.reshape(-1).astype(jnp.float32)
    o2 = xf @ w2.reshape(-1).astype(jnp.float32)
    yf = y.astype(jnp.float32)
    mean_y = jnp.mean(yf)
    mean_y2 = jnp.mean(yf * yf)
    mse1 = jnp.mean(o1 * o1) - 2.0 * mean_y * jnp.mean(o1) + mean_y2
    mse2 = jnp.mean(o2 * o2) - 2.0 * mean_y * jnp.mean(o2) + mean_y2
    s = sigma.reshape(2).astype(jnp.float32)
    return 0.5 * mse1 / (s[0] * s[0]) + 0.5 * mse2 / (s[1] * s[1])


def multitask_loss(x, w1, w2, y, sigma, *, tile_n=2048, num_parallel=2,
                   use_pallas=None):
    """x: (N, D), w1/w2: (1, D), y: (N,), sigma: (2,) -> scalar f32 loss."""
    N, D = x.shape

    # Keep bf16 inputs in bf16 (MXU does bf16xbf16->f32); upcast anything else.
    if x.dtype not in (jnp.bfloat16, jnp.float32):
        x = x.astype(jnp.float32)
    itemsize = int(jnp.dtype(x.dtype).itemsize)

    # Lane-padded VMEM footprint of one row (D=5 f32 occupies 512 B, not 20 B).
    padded_d = int(pl.cdiv(D, _LANES)) * _LANES
    bytes_per_row = padded_d * itemsize

    # Tiny problems: kernel launch + pipeline prologue dominate -> plain XLA.
    if use_pallas is None:
        use_pallas = N * bytes_per_row >= 256 * 1024
    if not use_pallas:
        return _xla_loss(x, w1, w2, y, sigma)

    # Generation-aware tile caps (v5e/v6e: 128 MiB VMEM; v7x: 64 MiB per TC).
    vmem_cap = _vmem_capacity_bytes()
    if vmem_cap >= 100 * 1024 * 1024:
        per_buf_cap = 12 * 1024 * 1024
        vmem_limit = 64 * 1024 * 1024
    else:
        per_buf_cap = 6 * 1024 * 1024
        vmem_limit = 40 * 1024 * 1024

    row_align = max(8, 32 // itemsize)              # f32 -> 8, bf16 -> 16
    rows_cap = max(row_align,
                   (per_buf_cap // bytes_per_row) // row_align * row_align)
    n_round = int(pl.cdiv(N, row_align)) * row_align
    tn = min(int(tile_n), int(rows_cap), n_round)
    tn = max(row_align, (tn // row_align) * row_align)

    total_steps = int(pl.cdiv(N, tn))
    n_cores = max(1, min(int(num_parallel), total_steps))   # 2-way split for v7x megacore
    steps_per_core = int(pl.cdiv(total_steps, n_cores))
    grid = (n_cores, steps_per_core)

    # Stack both linear weights into one lane-dense (D, 128) MXU operand.
    w12 = jnp.zeros((D, _LANES), dtype=x.dtype)
    w12 = w12.at[:, 0].set(w1.reshape(D).astype(x.dtype))
    w12 = w12.at[:, 1].set(w2.reshape(D).astype(x.dtype))

    def x_index_map(c, i):
        b = c * steps_per_core + i
        # Clamp to the last valid block; the in-kernel row mask zeroes any
        # rows >= N so duplicate/partial blocks contribute exactly 0.
        return (jnp.minimum(b, total_steps - 1), 0)

    kernel = functools.partial(_partial_sums_kernel, n_rows=N, tile_n=tn,
                               steps_per_core=steps_per_core)

    part_shape = jax.ShapeDtypeStruct((n_cores * 8, _LANES), jnp.float32)
    cost = pl.CostEstimate(
        flops=2 * N * D * _LANES,
        transcendentals=0,
        bytes_accessed=(N * D * itemsize + D * _LANES * itemsize
                        + 2 * n_cores * 8 * _LANES * 4),
    )

    psum, psq = pl.pallas_call(
        kernel,
        out_shape=(part_shape, part_shape),
        grid=grid,
        in_specs=[
            pl.BlockSpec((tn, D), x_index_map),               # streamed x tiles
            pl.BlockSpec((D, _LANES), lambda c, i: (0, 0)),   # resident stacked weights
        ],
        out_specs=(
            pl.BlockSpec((8, _LANES), lambda c, i: (c, 0)),   # per-core Σ o
            pl.BlockSpec((8, _LANES), lambda c, i: (c, 0)),   # per-core Σ o²
        ),
        compiler_params=pltpu.CompilerParams(
            dimension_semantics=("parallel", "arbitrary"),
            vmem_limit_bytes=vmem_limit,
        ),
        cost_estimate=cost,
    )(x, w12)

    # Tiny finalize in the wrapper: cross-core + cross-sublane reduce, closed
    # form for the broadcast MSE, then sigma weighting.  Only lanes 0/1 matter.
    inv_n = jnp.float32(1.0 / N)
    sum_o = jnp.sum(psum, axis=0)[:2]
    sum_o2 = jnp.sum(psq, axis=0)[:2]
    mean_o = sum_o * inv_n
    mean_o2 = sum_o2 * inv_n

    yf = y.astype(jnp.float32)
    mean_y = jnp.mean(yf)
    mean_y2 = jnp.mean(yf * yf)

    mse = mean_o2 - 2.0 * mean_y * mean_o + mean_y2          # (2,)
    s = sigma.reshape(2).astype(jnp.float32)
    # TODO(synk): for extremely large N, accumulate Σo/Σo² with a compensated
    # sum if f32 cancellation between mean(o²) and 2*mean(o)*mean(y) matters.
    return jnp.sum(mse * (0.5 / (s * s)))


def _reference(x, w1, w2, y, sigma):
    # Pure-JAX reference mirroring the PyTorch snippet (incl. MSE broadcasting).
    o1 = x @ w1.T           # (N, 1)
    o2 = x @ w2.T           # (N, 1)
    yb = y.reshape(1, -1)   # broadcast to (N, N)
    mse1 = jnp.mean((o1 - yb) ** 2)
    mse2 = jnp.mean((o2 - yb) ** 2)
    return 0.5 * mse1 / sigma[0] ** 2 + 0.5 * mse2 / sigma[1] ** 2


if __name__ == "__main__":
    key = jax.random.PRNGKey(0)
    kx, ky, kw1, kw2 = jax.random.split(key, 4)

    # Shapes implied by the module: nn.Linear(5, 1, bias=False), x (3, 5), y (3,)
    N, D = 3, 5
    x = jax.random.normal(kx, (N, D), dtype=jnp.float32)
    y = jax.random.normal(ky, (N,), dtype=jnp.float32)
    w1 = jax.random.normal(kw1, (1, D), dtype=jnp.float32) * 0.1
    w2 = jax.random.normal(kw2, (1, D), dtype=jnp.float32) * 0.1
    sigma = jnp.ones((2,), dtype=jnp.float32)   # self.sigma = nn.Parameter(torch.ones(2))

    ref = _reference(x, w1, w2, y, sigma)

    # Force the Pallas path even at tiny shape to exercise the kernel + masking.
    loss = multitask_loss(x, w1, w2, y, sigma, use_pallas=True)
    jax.block_until_ready(loss)
    assert jnp.allclose(loss, ref, rtol=1e-4, atol=1e-5), (loss, ref)

    # Auto-dispatch (tiny problem -> XLA fallback) must agree as well.
    loss_auto = multitask_loss(x, w1, w2, y, sigma)
    jax.block_until_ready(loss_auto)
    assert jnp.allclose(loss_auto, ref, rtol=1e-4, atol=1e-5), (loss_auto, ref)

    # Multi-step path: remainder masking (no pad), 2-way parallel row split,
    # clamped duplicate tile, non-unit sigma.
    N2, D2 = 300, 128
    x2 = jax.random.normal(kx, (N2, D2), dtype=jnp.float32)
    y2 = jax.random.normal(ky, (N2,), dtype=jnp.float32)
    w1b = jax.random.normal(kw1, (1, D2), dtype=jnp.float32) * 0.05
    w2b = jax.random.normal(kw2, (1, D2), dtype=jnp.float32) * 0.05
    sigma2 = jnp.array([0.7, 1.3], dtype=jnp.float32)
    loss2 = multitask_loss(x2, w1b, w2b, y2, sigma2, tile_n=128, use_pallas=True)
    jax.block_until_ready(loss2)
    ref2 = _reference(x2, w1b, w2b, y2, sigma2)
    assert jnp.allclose(loss2, ref2, rtol=1e-4, atol=1e-4), (loss2, ref2)

    print("KERNEL_OK")
</pallas_src>

<mosaic_0001>
module attributes {stable_mosaic.version = 11 : i64} {
  func.func @_partial_sums_kernel(%arg0: i32, %arg1: i32, %arg2: memref<8x5xf32, #tpu.memory_space<vmem>>, %arg3: memref<5x128xf32, #tpu.memory_space<vmem>>, %arg4: memref<8x128xf32, #tpu.memory_space<vmem>>, %arg5: memref<8x128xf32, #tpu.memory_space<vmem>>) attributes {dimension_semantics = [#tpu.dimension_semantics<parallel>, #tpu.dimension_semantics<arbitrary>], iteration_bounds = array<i64: 1, 1>, scalar_prefetch = 0 : i64, scratch_operands = 0 : i64, tpu.core_type = #tpu.core_type<tc>, window_params = [{transform_indices = @transform_0, window_bounds = array<i64: 8, 5>}, {pipeline_mode = #tpu.pipeline_mode<synchronous>, transform_indices = @transform_1, window_bounds = array<i64: 5, 128>}, {transform_indices = @transform_2, window_bounds = array<i64: 8, 128>}, {transform_indices = @transform_3, window_bounds = array<i64: 8, 128>}]} {
    %c0_i32 = arith.constant 0 : i32
    %0 = arith.cmpi eq, %arg1, %c0_i32 : i32
    %1 = arith.extui %0 : i1 to i32
    %c0_i32_0 = arith.constant 0 : i32
    %2 = arith.cmpi ne, %1, %c0_i32_0 : i32
    scf.if %2 {
      %cst_15 = arith.constant 0.000000e+00 : f32
      %26 = vector.broadcast %cst_15 : f32 to vector<8x128xf32>
      %c0_16 = arith.constant 0 : index
      %c0_17 = arith.constant 0 : index
      %27 = vector.load %arg4[%c0_16, %c0_17] : memref<8x128xf32, #tpu.memory_space<vmem>>, vector<8x128xf32>
      tpu.vector_store %arg4[%c0_16, %c0_17], %26 {strides = array<i32>} : memref<8x128xf32, #tpu.memory_space<vmem>>, vector<8x128xf32>,
      %cst_18 = arith.constant 0.000000e+00 : f32
      %28 = vector.broadcast %cst_18 : f32 to vector<8x128xf32>
      %c0_19 = arith.constant 0 : index
      %c0_20 = arith.constant 0 : index
      %29 = vector.load %arg5[%c0_19, %c0_20] : memref<8x128xf32, #tpu.memory_space<vmem>>, vector<8x128xf32>
      tpu.vector_store %arg5[%c0_19, %c0_20], %28 {strides = array<i32>} : memref<8x128xf32, #tpu.memory_space<vmem>>, vector<8x128xf32>,
    } else {
    }
    %c0 = arith.constant 0 : index
    %c0_1 = arith.constant 0 : index
    %3 = vector.load %arg2[%c0, %c0_1] : memref<8x5xf32, #tpu.memory_space<vmem>>, vector<8x5xf32>
    %c0_2 = arith.constant 0 : index
    %c0_3 = arith.constant 0 : index
    %4 = vector.load %arg3[%c0_2, %c0_3] : memref<5x128xf32, #tpu.memory_space<vmem>>, vector<5x128xf32>
    %cst = arith.constant dense<0.000000e+00> : vector<8x128xf32>
    %5 = tpu.matmul %3, %4, %cst {dimension_numbers = #tpu.dot_dimension_numbers<[1], [0], [0], [1], [0, 0, 1, 1], [], []>} : vector<8x5xf32>, vector<5x128xf32>, vector<8x128xf32> -> vector<8x128xf32>
    %c1_i32 = arith.constant 1 : i32
    %6 = arith.muli %arg0, %c1_i32 : i32
    %7 = arith.addi %6, %arg1 : i32
    %c8_i32 = arith.constant 8 : i32
    %8 = arith.muli %7, %c8_i32 : i32
    %9 = tpu.iota {dimensions = array<i32: 0>} : vector<8x128xi32>
    %10 = vector.broadcast %8 : i32 to vector<8x128xi32>
    %11 = arith.addi %9, %10 : vector<8x128xi32>
    %c3_i32 = arith.constant 3 : i32
    %12 = vector.broadcast %c3_i32 : i32 to vector<8x128xi32>
    %13 = arith.cmpi slt, %11, %12 : vector<8x128xi32>
    %cst_4 = arith.constant 0.000000e+00 : f32
    %14 = vector.broadcast %cst_4 : f32 to vector<8x128xf32>
    %15 = arith.select %13, %5, %14 : vector<8x128xi1>, vector<8x128xf32>
    %16 = vector.shape_cast %15 : vector<8x128xf32> to vector<1x8x128xf32>
    %c0_5 = arith.constant 0 : index
    %c0_6 = arith.constant 0 : index
    %17 = vector.load %arg4[%c0_5, %c0_6] : memref<8x128xf32, #tpu.memory_space<vmem>>, vector<8x128xf32>
    %cst_7 = arith.constant dense<0.000000e+00> : vector<8x128xf32>
    %18 = vector.multi_reduction <add>, %16, %cst_7 [0] : vector<1x8x128xf32> to vector<8x128xf32>
    %19 = arith.addf %17, %18 : vector<8x128xf32>
    %c0_8 = arith.constant 0 : index
    %c0_9 = arith.constant 0 : index
    %20 = vector.load %arg4[%c0_8, %c0_9] : memref<8x128xf32, #tpu.memory_space<vmem>>, vector<8x128xf32>
    tpu.vector_store %arg4[%c0_8, %c0_9], %19 {strides = array<i32>} : memref<8x128xf32, #tpu.memory_space<vmem>>, vector<8x128xf32>,
    %c0_10 = arith.constant 0 : index
    %c0_11 = arith.constant 0 : index
    %21 = vector.load %arg5[%c0_10, %c0_11] : memref<8x128xf32, #tpu.memory_space<vmem>>, vector<8x128xf32>
    %22 = arith.mulf %16, %16 : vector<1x8x128xf32>
    %cst_12 = arith.constant dense<0.000000e+00> : vector<8x128xf32>
    %23 = vector.multi_reduction <add>, %22, %cst_12 [0] : vector<1x8x128xf32> to vector<8x128xf32>
    %24 = arith.addf %21, %23 : vector<8x128xf32>
    %c0_13 = arith.constant 0 : index
    %c0_14 = arith.constant 0 : index
    %25 = vector.load %arg5[%c0_13, %c0_14] : memref<8x128xf32, #tpu.memory_space<vmem>>, vector<8x128xf32>
    tpu.vector_store %arg5[%c0_13, %c0_14], %24 {strides = array<i32>} : memref<8x128xf32, #tpu.memory_space<vmem>>, vector<8x128xf32>,
    return
  }
  func.func @transform_0(%arg0: i32, %arg1: i32) -> (i32, i32) {
    %c1_i32 = arith.constant 1 : i32
    %0 = arith.muli %arg0, %c1_i32 : i32
    %1 = arith.addi %0, %arg1 : i32
    %c0_i32 = arith.constant 0 : i32
    %2 = arith.minsi %1, %c0_i32 : i32
    %c0_i32_0 = arith.constant 0 : i32
    %c0_i32_1 = arith.constant 0 : i32
    return %2, %c0_i32_0 : i32, i32
  }
  func.func @transform_1(%arg0: i32, %arg1: i32) -> (i32, i32) {
    %c0_i32 = arith.constant 0 : i32
    %c0_i32_0 = arith.constant 0 : i32
    %c0_i32_1 = arith.constant 0 : i32
    return %c0_i32, %c0_i32_0 : i32, i32
  }
  func.func @transform_2(%arg0: i32, %arg1: i32) -> (i32, i32) {
    %c0_i32 = arith.constant 0 : i32
    %c0_i32_0 = arith.constant 0 : i32
    return %arg0, %c0_i32 : i32, i32
  }
  func.func @transform_3(%arg0: i32, %arg1: i32) -> (i32, i32) {
    %c0_i32 = arith.constant 0 : i32
    %c0_i32_0 = arith.constant 0 : i32
    return %arg0, %c0_i32 : i32, i32
  }
}

</mosaic_0001>

<bundles_post_ra>
// kernel: tpu_custom_call.1
= control target key start
LH: loop header
LB: loop body
LE: loop exit
PB: predicated region body
PF: predicated region fallthrough
CT: control target
= control target key end

     0   :  { %9 = vsyncpa [#allocation3], 0  ;;  %s302_s0 = inlined_call_operand.hbm [shape: f32[3,5], index: 0, kind: input, shape index: {}]   ;;  %s303_s1 = inlined_call_operand.hbm [shape: f32[5,128], index: 1, kind: input, shape index: {}]   ;;  %s304_s2 = inlined_call_operand.hbm [shape: f32[8,128], index: 2, kind: output, shape index: {0}]   ;;  %s305_s3 = inlined_call_operand.hbm [shape: f32[8,128], index: 3, kind: output, shape index: {1}]  }
   0x1   :  { %10 = vsyncpa [#allocation6], 0 }
   0x2   :  { %11 = vsyncpa [#allocation4], 0 }
   0x3   :  { %12 = vsyncpa [#allocation9], 0 }
   0x4   :  { %23 = vsyncadd [#allocation3], 64  ;;  %s28_s14 = sshll.u32 %s302_s0, 4  ;;  %s264_s15 = smov [#allocation2]   ;;  %s29_s14 = int_to_ptr.hbm [resolvable:$true] %s28_s14 }
   0x5   :  { %s30_s16 = sshll.u32 %s264_s15, 4  ;;  %s42_s19 = sshll.u32 %s303_s1, 4  ;;  %s31_s16 = int_to_ptr.vmem [resolvable:$true] %s30_s16  ;;  %s43_s19 = int_to_ptr.hbm [resolvable:$true] %s42_s19 }
   0x6   :  { %s265_s20 = smov 64   ;;  %s266_s21 = smov 4  }
   0x7   :  { %36 = dma.hbm_to_vmem [thread:$0]  %s29_s14, 64, %s31_s16, [#allocation3], %s265_s20, %s265_s20, %s266_s21  }
   0x8   :  { %s267_s22 = smov [#allocation5]  }
   0x9   :  { %s44_s23 = sshll.u32 %s267_s22, 4  ;;  %s45_s23 = int_to_ptr.vmem [resolvable:$true] %s44_s23 }
   0xa   :  { %47 = dma.hbm_to_vmem [thread:$0]  %s43_s19, 128, %s45_s23, [#allocation6]  }
   0xb   :  { %256 = dma.done.wait [#allocation3], 128  }
   0xc   :  { %257 = vsyncadd [#allocation3], 4294967168 }
   0xd   :  { %258 = dma.done.wait [#allocation6], 128  }
   0xe   :  { %259 = vsyncadd [#allocation6], 4294967168  ;;  %vm74_vm0 = vcmask 1044480   ;;  %vm70_vm1 = vcmask 39936   ;;  %v69_v0 = vld [vmem:[#allocation5] sm:$0x1f]  ;;  %v100_v2 = vlaneseq }
   0xf   :  { %v68_v1 = vld [vmem:[#allocation2] sm:$0xff]  ;;  %151 = vmatpush.msk.msra.mxu0 %vm74_vm0, %v69_v0  ;;  %s268_s0 = smov [#allocation7]   ;;  %s122_s26 = sshll.u32 %s304_s2, 4  ;;  %s123_s26 = int_to_ptr.hbm [resolvable:$true] %s122_s26 }
  0x10   :  { %152 = vmatmul.msk.f32.vlgmr.msra.gmra.mxu0 %vm70_vm1, %v68_v1  ;;  %v101_v3 = vshrl.u32 %v100_v2, 7  ;;  %s120_s1 = sshll.u32 %s268_s0, 4  ;;  %s269_s27 = smov [#allocation8]   ;;  %s121_s1 = int_to_ptr.vmem [resolvable:$true] %s120_s1 }
  0x11   :  { %s131_s28 = sshll.u32 %s269_s27, 4  ;;  %s133_s4 = sshll.u32 %s305_s3, 4  ;;  %s132_s28 = int_to_ptr.vmem [resolvable:$true] %s131_s28  ;;  %s134_s4 = int_to_ptr.hbm [resolvable:$true] %s133_s4 }
  0x12   :  { %vm104_vm2 = vcmp.lt.s32.totalorder %v101_v3, 3 }
  0x8d   :  { %v95_v4 = vpop.f32.mrf.mxu0 }
  0x8e   :  { %v105_v5 = vsel %vm104_vm2, %v95_v4, 0.0 }
  0x8f   :  { %v111_v6 = vmul.f32 %v105_v5, %v105_v5  ;;  %109 = vst [vmem:[#allocation7] sm:$0xff] %v105_v5 }
  0x90   :  { %125 = dma.vmem_to_hbm [thread:$0]  %s121_s1, 128, %s123_s26, [#allocation4]  }
  0x91   :  { %114 = vst [vmem:[#allocation8] sm:$0xff] %v111_v6 }
  0x92   :  { %136 = dma.vmem_to_hbm [thread:$0]  %s132_s28, 128, %s134_s4, [#allocation9]  }
  0x93   :  { %260 = dma.done.wait [#allocation4], 128  }
  0x94   :  { %261 = vsyncadd [#allocation4], 4294967168 }
  0x95   :  { %262 = dma.done.wait [#allocation9], 128  }
  0x96   :  { %263 = vsyncadd [#allocation9], 4294967168 }
  0x97   :  { %145 = vsyncpa [#allocation3], 1 }
  0x98   :  { %146 = vsyncpa [#allocation6], 1 }
  0x99   :  { %147 = vsyncpa [#allocation4], 1 }
  0x9a   :  { %148 = vsyncpa [#allocation9], 1 }

</bundles_post_ra>
